<compile_context>
chip_gen: v5e
topology: v5e:2x2
jax: 0.10.0
libtpu: 0.0.40
codegen_flags: <defaults>
</compile_context>

<pallas_src>
import jax
import jax.numpy as jnp
from jax.experimental import pallas as pl
from jax.experimental.pallas import tpu as pltpu

_LANE = 128
_SUBLANE = 8


def _mlp_small_kernel(p_ref, x_ref, o_ref):
    # p_ref : SMEM f32[60 + 5*planes] packed as
    #         [w1(8*2), b1(8), w2(4*8), b2(4), w3(planes*4), b3(planes)]
    # x_ref : VMEM (2, tile_rows, 128)
    # o_ref : VMEM (planes, tile_rows, 128)
    planes = o_ref.shape[0]

    # Packed-parameter offsets (must match _pack_params).
    W1, B1 = 0, 16
    W2, B2 = 24, 56
    W3, B3 = 60, 60 + 4 * planes

    def silu(v):
        # Exact rewrite of v * sigmoid(v): a single EUP op (tanh) instead of
        # two (exp + reciprocal).
        return v * (0.5 + 0.5 * jnp.tanh(0.5 * v))

    def tree_sum(terms):
        # Balanced adds -> shorter dependency chains for the 4-wide VALU.
        while len(terms) > 1:
            nxt = [terms[i] + terms[i + 1] for i in range(0, len(terms) - 1, 2)]
            if len(terms) % 2:
                nxt.append(terms[-1])
            terms = nxt
        return terms[0]

    x0 = x_ref[0].astype(jnp.float32)   # (tile_rows, 128) dense vreg tiles
    x1 = x_ref[1].astype(jnp.float32)

    # Layer 1: 2 -> 8, SiLU.  Unrolled scalar-broadcast multiply-adds (VPU).
    h1 = [
        silu(x0 * p_ref[W1 + 2 * c] + x1 * p_ref[W1 + 2 * c + 1] + p_ref[B1 + c])
        for c in range(8)
    ]

    # Layer 2: 8 -> 4, SiLU.
    h2 = [
        silu(tree_sum([h1[k] * p_ref[W2 + 8 * c + k] for k in range(8)])
             + p_ref[B2 + c])
        for c in range(4)
    ]

    # Layer 3: 4 -> planes (no activation).  Unrolled; fine for the small
    # `planes` NIFF uses.
    # TODO(synk): for planes >= ~64 a jnp.dot (MXU) path would be preferable.
    for c in range(planes):
        out_c = tree_sum([h2[k] * p_ref[W3 + 4 * c + k] for k in range(4)]) \
            + p_ref[B3 + c]
        o_ref[c] = out_c.astype(o_ref.dtype)


def _round_up(a, b):
    return pl.cdiv(a, b) * b


def _pack_params(params):
    return jnp.concatenate([p.reshape(-1).astype(jnp.float32) for p in params])


def mlp_small_forward(x, params, *, tile_rows=128):
    """x: (2, H, W).  Returns (1, planes, H, W), matching MLP_small.forward."""
    w1, b1, w2, b2, w3, b3 = params
    planes = w3.shape[0]
    c_in, H, W = x.shape
    assert c_in == 2
    N = H * W

    # Spatial pixels laid out as (rows, 128) lanes; tile is whole sublane rows.
    rows = pl.cdiv(N, _LANE)
    tile_r = min(_round_up(tile_rows, _SUBLANE), _round_up(rows, _SUBLANE))
    # Keep >= 2 grid steps when there is enough data (v7x: 2 TensorCores).
    if rows > _SUBLANE and pl.cdiv(rows, tile_r) < 2:
        tile_r = max(_SUBLANE, _round_up(pl.cdiv(rows, 2), _SUBLANE))
    rows_pad = _round_up(rows, tile_r)
    n_pad = rows_pad * _LANE

    x2d = x.reshape(c_in, N)
    if n_pad != N:
        x2d = jnp.pad(x2d, ((0, 0), (0, n_pad - N)))
    x3d = x2d.reshape(c_in, rows_pad, _LANE)

    packed = _pack_params(params)
    grid = (rows_pad // tile_r,)

    cost = pl.CostEstimate(
        flops=2 * N * (2 * 8 + 8 * 4 + 4 * planes),
        transcendentals=12 * N,                      # 8 + 4 SiLU channels
        bytes_accessed=4 * N * (c_in + planes) + 4 * int(packed.size),
    )

    out3d = pl.pallas_call(
        _mlp_small_kernel,
        out_shape=jax.ShapeDtypeStruct((planes, rows_pad, _LANE), x.dtype),
        grid=grid,
        in_specs=[
            pl.BlockSpec(memory_space=pltpu.MemorySpace.SMEM),         # params
            pl.BlockSpec((c_in, tile_r, _LANE), lambda i: (0, i, 0)),  # x tile
        ],
        out_specs=pl.BlockSpec((planes, tile_r, _LANE), lambda i: (0, i, 0)),
        compiler_params=pltpu.CompilerParams(
            dimension_semantics=("parallel",)),
        cost_estimate=cost,
    )(packed, x3d)

    out2d = out3d.reshape(planes, n_pad)[:, :N]
    return out2d.reshape(1, planes, H, W)


def init_params(key, planes):
    """Deterministic init mirroring Conv2d(C_in, C_out, 1) parameter shapes."""
    k1, k2, k3, k4, k5, k6 = jax.random.split(key, 6)
    # weights: (C_out, C_in), biases: (C_out, 1)  (1x1 conv kernels squeezed)
    w1 = jax.random.normal(k1, (8, 2), jnp.float32) * 0.5
    b1 = jax.random.normal(k2, (8, 1), jnp.float32) * 0.1
    w2 = jax.random.normal(k3, (4, 8), jnp.float32) * 0.3
    b2 = jax.random.normal(k4, (4, 1), jnp.float32) * 0.1
    w3 = jax.random.normal(k5, (planes, 4), jnp.float32) * 0.3
    b3 = jax.random.normal(k6, (planes, 1), jnp.float32) * 0.1
    return (w1, b1, w2, b2, w3, b3)


def reference_forward(x, params):
    """Pure-JAX reference of the PyTorch forward (for verification)."""
    w1, b1, w2, b2, w3, b3 = params
    c, H, W = x.shape
    xf = x.reshape(c, H * W)
    h1 = jax.nn.silu(w1 @ xf + b1)
    h2 = jax.nn.silu(w2 @ h1 + b2)
    o = w3 @ h2 + b3
    return o.reshape(1, w3.shape[0], H, W)


if __name__ == "__main__":
    planes = 4
    H = W = 16
    key = jax.random.PRNGKey(0)
    kx, kp = jax.random.split(key)

    x = jax.random.normal(kx, (2, H, W), jnp.float32)
    params = init_params(kp, planes)

    out = mlp_small_forward(x, params)
    out = jax.block_until_ready(out)

    ref = reference_forward(x, params)
    assert out.shape == (1, planes, H, W)
    assert jnp.allclose(out, ref, atol=1e-5, rtol=1e-5), "mismatch vs reference"

    print("KERNEL_OK")
</pallas_src>

<mosaic_0001>
module attributes {stable_mosaic.version = 11 : i64} {
  func.func @_mlp_small_kernel(%arg0: i32, %arg1: memref<80xf32, #tpu.memory_space<smem>>, %arg2: memref<2x8x128xf32, #tpu.memory_space<vmem>>, %arg3: memref<4x8x128xf32, #tpu.memory_space<vmem>>) attributes {dimension_semantics = [#tpu.dimension_semantics<parallel>], iteration_bounds = array<i64: 1>, scalar_prefetch = 0 : i64, scratch_operands = 0 : i64, tpu.core_type = #tpu.core_type<tc>, window_params = [{transform_indices = @transform_0, window_bounds = array<i64: 80>}, {transform_indices = @transform_1, window_bounds = array<i64: 2, 8, 128>}, {transform_indices = @transform_2, window_bounds = array<i64: 4, 8, 128>}]} {
    %c0 = arith.constant 0 : index
    %c0_0 = arith.constant 0 : index
    %c0_1 = arith.constant 0 : index
    %0 = vector.load %arg2[%c0, %c0_0, %c0_1] : memref<2x8x128xf32, #tpu.memory_space<vmem>>, vector<1x8x128xf32>
    %1 = vector.shape_cast %0 : vector<1x8x128xf32> to vector<8x128xf32>
    %c1 = arith.constant 1 : index
    %c0_2 = arith.constant 0 : index
    %c0_3 = arith.constant 0 : index
    %2 = vector.load %arg2[%c1, %c0_2, %c0_3] : memref<2x8x128xf32, #tpu.memory_space<vmem>>, vector<1x8x128xf32>
    %3 = vector.shape_cast %2 : vector<1x8x128xf32> to vector<8x128xf32>
    %c0_4 = arith.constant 0 : index
    %4 = memref.load %arg1[%c0_4] : memref<80xf32, #tpu.memory_space<smem>>
    %5 = vector.broadcast %4 : f32 to vector<8x128xf32>
    %6 = arith.mulf %1, %5 : vector<8x128xf32>
    %c1_5 = arith.constant 1 : index
    %7 = memref.load %arg1[%c1_5] : memref<80xf32, #tpu.memory_space<smem>>
    %8 = vector.broadcast %7 : f32 to vector<8x128xf32>
    %9 = arith.mulf %3, %8 : vector<8x128xf32>
    %10 = arith.addf %6, %9 : vector<8x128xf32>
    %c16 = arith.constant 16 : index
    %11 = memref.load %arg1[%c16] : memref<80xf32, #tpu.memory_space<smem>>
    %12 = vector.broadcast %11 : f32 to vector<8x128xf32>
    %13 = arith.addf %10, %12 : vector<8x128xf32>
    %cst = arith.constant 5.000000e-01 : f32
    %14 = vector.broadcast %cst : f32 to vector<8x128xf32>
    %15 = arith.mulf %14, %13 : vector<8x128xf32>
    %16 = math.tanh %15 : vector<8x128xf32>
    %cst_6 = arith.constant 5.000000e-01 : f32
    %17 = vector.broadcast %cst_6 : f32 to vector<8x128xf32>
    %18 = arith.mulf %17, %16 : vector<8x128xf32>
    %cst_7 = arith.constant 5.000000e-01 : f32
    %19 = vector.broadcast %cst_7 : f32 to vector<8x128xf32>
    %20 = arith.addf %19, %18 : vector<8x128xf32>
    %21 = arith.mulf %13, %20 : vector<8x128xf32>
    %c2 = arith.constant 2 : index
    %22 = memref.load %arg1[%c2] : memref<80xf32, #tpu.memory_space<smem>>
    %23 = vector.broadcast %22 : f32 to vector<8x128xf32>
    %24 = arith.mulf %1, %23 : vector<8x128xf32>
    %c3 = arith.constant 3 : index
    %25 = memref.load %arg1[%c3] : memref<80xf32, #tpu.memory_space<smem>>
    %26 = vector.broadcast %25 : f32 to vector<8x128xf32>
    %27 = arith.mulf %3, %26 : vector<8x128xf32>
    %28 = arith.addf %24, %27 : vector<8x128xf32>
    %c17 = arith.constant 17 : index
    %29 = memref.load %arg1[%c17] : memref<80xf32, #tpu.memory_space<smem>>
    %30 = vector.broadcast %29 : f32 to vector<8x128xf32>
    %31 = arith.addf %28, %30 : vector<8x128xf32>
    %cst_8 = arith.constant 5.000000e-01 : f32
    %32 = vector.broadcast %cst_8 : f32 to vector<8x128xf32>
    %33 = arith.mulf %32, %31 : vector<8x128xf32>
    %34 = math.tanh %33 : vector<8x128xf32>
    %cst_9 = arith.constant 5.000000e-01 : f32
    %35 = vector.broadcast %cst_9 : f32 to vector<8x128xf32>
    %36 = arith.mulf %35, %34 : vector<8x128xf32>
    %cst_10 = arith.constant 5.000000e-01 : f32
    %37 = vector.broadcast %cst_10 : f32 to vector<8x128xf32>
    %38 = arith.addf %37, %36 : vector<8x128xf32>
    %39 = arith.mulf %31, %38 : vector<8x128xf32>
    %c4 = arith.constant 4 : index
    %40 = memref.load %arg1[%c4] : memref<80xf32, #tpu.memory_space<smem>>
    %41 = vector.broadcast %40 : f32 to vector<8x128xf32>
    %42 = arith.mulf %1, %41 : vector<8x128xf32>
    %c5 = arith.constant 5 : index
    %43 = memref.load %arg1[%c5] : memref<80xf32, #tpu.memory_space<smem>>
    %44 = vector.broadcast %43 : f32 to vector<8x128xf32>
    %45 = arith.mulf %3, %44 : vector<8x128xf32>
    %46 = arith.addf %42, %45 : vector<8x128xf32>
    %c18 = arith.constant 18 : index
    %47 = memref.load %arg1[%c18] : memref<80xf32, #tpu.memory_space<smem>>
    %48 = vector.broadcast %47 : f32 to vector<8x128xf32>
    %49 = arith.addf %46, %48 : vector<8x128xf32>
    %cst_11 = arith.constant 5.000000e-01 : f32
    %50 = vector.broadcast %cst_11 : f32 to vector<8x128xf32>
    %51 = arith.mulf %50, %49 : vector<8x128xf32>
    %52 = math.tanh %51 : vector<8x128xf32>
    %cst_12 = arith.constant 5.000000e-01 : f32
    %53 = vector.broadcast %cst_12 : f32 to vector<8x128xf32>
    %54 = arith.mulf %53, %52 : vector<8x128xf32>
    %cst_13 = arith.constant 5.000000e-01 : f32
    %55 = vector.broadcast %cst_13 : f32 to vector<8x128xf32>
    %56 = arith.addf %55, %54 : vector<8x128xf32>
    %57 = arith.mulf %49, %56 : vector<8x128xf32>
    %c6 = arith.constant 6 : index
    %58 = memref.load %arg1[%c6] : memref<80xf32, #tpu.memory_space<smem>>
    %59 = vector.broadcast %58 : f32 to vector<8x128xf32>
    %60 = arith.mulf %1, %59 : vector<8x128xf32>
    %c7 = arith.constant 7 : index
    %61 = memref.load %arg1[%c7] : memref<80xf32, #tpu.memory_space<smem>>
    %62 = vector.broadcast %61 : f32 to vector<8x128xf32>
    %63 = arith.mulf %3, %62 : vector<8x128xf32>
    %64 = arith.addf %60, %63 : vector<8x128xf32>
    %c19 = arith.constant 19 : index
    %65 = memref.load %arg1[%c19] : memref<80xf32, #tpu.memory_space<smem>>
    %66 = vector.broadcast %65 : f32 to vector<8x128xf32>
    %67 = arith.addf %64, %66 : vector<8x128xf32>
    %cst_14 = arith.constant 5.000000e-01 : f32
    %68 = vector.broadcast %cst_14 : f32 to vector<8x128xf32>
    %69 = arith.mulf %68, %67 : vector<8x128xf32>
    %70 = math.tanh %69 : vector<8x128xf32>
    %cst_15 = arith.constant 5.000000e-01 : f32
    %71 = vector.broadcast %cst_15 : f32 to vector<8x128xf32>
    %72 = arith.mulf %71, %70 : vector<8x128xf32>
    %cst_16 = arith.constant 5.000000e-01 : f32
    %73 = vector.broadcast %cst_16 : f32 to vector<8x128xf32>
    %74 = arith.addf %73, %72 : vector<8x128xf32>
    %75 = arith.mulf %67, %74 : vector<8x128xf32>
    %c8 = arith.constant 8 : index
    %76 = memref.load %arg1[%c8] : memref<80xf32, #tpu.memory_space<smem>>
    %77 = vector.broadcast %76 : f32 to vector<8x128xf32>
    %78 = arith.mulf %1, %77 : vector<8x128xf32>
    %c9 = arith.constant 9 : index
    %79 = memref.load %arg1[%c9] : memref<80xf32, #tpu.memory_space<smem>>
    %80 = vector.broadcast %79 : f32 to vector<8x128xf32>
    %81 = arith.mulf %3, %80 : vector<8x128xf32>
    %82 = arith.addf %78, %81 : vector<8x128xf32>
    %c20 = arith.constant 20 : index
    %83 = memref.load %arg1[%c20] : memref<80xf32, #tpu.memory_space<smem>>
    %84 = vector.broadcast %83 : f32 to vector<8x128xf32>
    %85 = arith.addf %82, %84 : vector<8x128xf32>
    %cst_17 = arith.constant 5.000000e-01 : f32
    %86 = vector.broadcast %cst_17 : f32 to vector<8x128xf32>
    %87 = arith.mulf %86, %85 : vector<8x128xf32>
    %88 = math.tanh %87 : vector<8x128xf32>
    %cst_18 = arith.constant 5.000000e-01 : f32
    %89 = vector.broadcast %cst_18 : f32 to vector<8x128xf32>
    %90 = arith.mulf %89, %88 : vector<8x128xf32>
    %cst_19 = arith.constant 5.000000e-01 : f32
    %91 = vector.broadcast %cst_19 : f32 to vector<8x128xf32>
    %92 = arith.addf %91, %90 : vector<8x128xf32>
    %93 = arith.mulf %85, %92 : vector<8x128xf32>
    %c10 = arith.constant 10 : index
    %94 = memref.load %arg1[%c10] : memref<80xf32, #tpu.memory_space<smem>>
    %95 = vector.broadcast %94 : f32 to vector<8x128xf32>
    %96 = arith.mulf %1, %95 : vector<8x128xf32>
    %c11 = arith.constant 11 : index
    %97 = memref.load %arg1[%c11] : memref<80xf32, #tpu.memory_space<smem>>
    %98 = vector.broadcast %97 : f32 to vector<8x128xf32>
    %99 = arith.mulf %3, %98 : vector<8x128xf32>
    %100 = arith.addf %96, %99 : vector<8x128xf32>
    %c21 = arith.constant 21 : index
    %101 = memref.load %arg1[%c21] : memref<80xf32, #tpu.memory_space<smem>>
    %102 = vector.broadcast %101 : f32 to vector<8x128xf32>
    %103 = arith.addf %100, %102 : vector<8x128xf32>
    %cst_20 = arith.constant 5.000000e-01 : f32
    %104 = vector.broadcast %cst_20 : f32 to vector<8x128xf32>
    %105 = arith.mulf %104, %103 : vector<8x128xf32>
    %106 = math.tanh %105 : vector<8x128xf32>
    %cst_21 = arith.constant 5.000000e-01 : f32
    %107 = vector.broadcast %cst_21 : f32 to vector<8x128xf32>
    %108 = arith.mulf %107, %106 : vector<8x128xf32>
    %cst_22 = arith.constant 5.000000e-01 : f32
    %109 = vector.broadcast %cst_22 : f32 to vector<8x128xf32>
    %110 = arith.addf %109, %108 : vector<8x128xf32>
    %111 = arith.mulf %103, %110 : vector<8x128xf32>
    %c12 = arith.constant 12 : index
    %112 = memref.load %arg1[%c12] : memref<80xf32, #tpu.memory_space<smem>>
    %113 = vector.broadcast %112 : f32 to vector<8x128xf32>
    %114 = arith.mulf %1, %113 : vector<8x128xf32>
    %c13 = arith.constant 13 : index
    %115 = memref.load %arg1[%c13] : memref<80xf32, #tpu.memory_space<smem>>
    %116 = vector.broadcast %115 : f32 to vector<8x128xf32>
    %117 = arith.mulf %3, %116 : vector<8x128xf32>
    %118 = arith.addf %114, %117 : vector<8x128xf32>
    %c22 = arith.constant 22 : index
    %119 = memref.load %arg1[%c22] : memref<80xf32, #tpu.memory_space<smem>>
    %120 = vector.broadcast %119 : f32 to vector<8x128xf32>
    %121 = arith.addf %118, %120 : vector<8x128xf32>
    %cst_23 = arith.constant 5.000000e-01 : f32
    %122 = vector.broadcast %cst_23 : f32 to vector<8x128xf32>
    %123 = arith.mulf %122, %121 : vector<8x128xf32>
    %124 = math.tanh %123 : vector<8x128xf32>
    %cst_24 = arith.constant 5.000000e-01 : f32
    %125 = vector.broadcast %cst_24 : f32 to vector<8x128xf32>
    %126 = arith.mulf %125, %124 : vector<8x128xf32>
    %cst_25 = arith.constant 5.000000e-01 : f32
    %127 = vector.broadcast %cst_25 : f32 to vector<8x128xf32>
    %128 = arith.addf %127, %126 : vector<8x128xf32>
    %129 = arith.mulf %121, %128 : vector<8x128xf32>
    %c14 = arith.constant 14 : index
    %130 = memref.load %arg1[%c14] : memref<80xf32, #tpu.memory_space<smem>>
    %131 = vector.broadcast %130 : f32 to vector<8x128xf32>
    %132 = arith.mulf %1, %131 : vector<8x128xf32>
    %c15 = arith.constant 15 : index
    %133 = memref.load %arg1[%c15] : memref<80xf32, #tpu.memory_space<smem>>
    %134 = vector.broadcast %133 : f32 to vector<8x128xf32>
    %135 = arith.mulf %3, %134 : vector<8x128xf32>
    %136 = arith.addf %132, %135 : vector<8x128xf32>
    %c23 = arith.constant 23 : index
    %137 = memref.load %arg1[%c23] : memref<80xf32, #tpu.memory_space<smem>>
    %138 = vector.broadcast %137 : f32 to vector<8x128xf32>
    %139 = arith.addf %136, %138 : vector<8x128xf32>
    %cst_26 = arith.constant 5.000000e-01 : f32
    %140 = vector.broadcast %cst_26 : f32 to vector<8x128xf32>
    %141 = arith.mulf %140, %139 : vector<8x128xf32>
    %142 = math.tanh %141 : vector<8x128xf32>
    %cst_27 = arith.constant 5.000000e-01 : f32
    %143 = vector.broadcast %cst_27 : f32 to vector<8x128xf32>
    %144 = arith.mulf %143, %142 : vector<8x128xf32>
    %cst_28 = arith.constant 5.000000e-01 : f32
    %145 = vector.broadcast %cst_28 : f32 to vector<8x128xf32>
    %146 = arith.addf %145, %144 : vector<8x128xf32>
    %147 = arith.mulf %139, %146 : vector<8x128xf32>
    %c24 = arith.constant 24 : index
    %148 = memref.load %arg1[%c24] : memref<80xf32, #tpu.memory_space<smem>>
    %149 = vector.broadcast %148 : f32 to vector<8x128xf32>
    %150 = arith.mulf %21, %149 : vector<8x128xf32>
    %c25 = arith.constant 25 : index
    %151 = memref.load %arg1[%c25] : memref<80xf32, #tpu.memory_space<smem>>
    %152 = vector.broadcast %151 : f32 to vector<8x128xf32>
    %153 = arith.mulf %39, %152 : vector<8x128xf32>
    %c26 = arith.constant 26 : index
    %154 = memref.load %arg1[%c26] : memref<80xf32, #tpu.memory_space<smem>>
    %155 = vector.broadcast %154 : f32 to vector<8x128xf32>
    %156 = arith.mulf %57, %155 : vector<8x128xf32>
    %c27 = arith.constant 27 : index
    %157 = memref.load %arg1[%c27] : memref<80xf32, #tpu.memory_space<smem>>
    %158 = vector.broadcast %157 : f32 to vector<8x128xf32>
    %159 = arith.mulf %75, %158 : vector<8x128xf32>
    %c28 = arith.constant 28 : index
    %160 = memref.load %arg1[%c28] : memref<80xf32, #tpu.memory_space<smem>>
    %161 = vector.broadcast %160 : f32 to vector<8x128xf32>
    %162 = arith.mulf %93, %161 : vector<8x128xf32>
    %c29 = arith.constant 29 : index
    %163 = memref.load %arg1[%c29] : memref<80xf32, #tpu.memory_space<smem>>
    %164 = vector.broadcast %163 : f32 to vector<8x128xf32>
    %165 = arith.mulf %111, %164 : vector<8x128xf32>
    %c30 = arith.constant 30 : index
    %166 = memref.load %arg1[%c30] : memref<80xf32, #tpu.memory_space<smem>>
    %167 = vector.broadcast %166 : f32 to vector<8x128xf32>
    %168 = arith.mulf %129, %167 : vector<8x128xf32>
    %c31 = arith.constant 31 : index
    %169 = memref.load %arg1[%c31] : memref<80xf32, #tpu.memory_space<smem>>
    %170 = vector.broadcast %169 : f32 to vector<8x128xf32>
    %171 = arith.mulf %147, %170 : vector<8x128xf32>
    %172 = arith.addf %150, %153 : vector<8x128xf32>
    %173 = arith.addf %156, %159 : vector<8x128xf32>
    %174 = arith.addf %162, %165 : vector<8x128xf32>
    %175 = arith.addf %168, %171 : vector<8x128xf32>
    %176 = arith.addf %172, %173 : vector<8x128xf32>
    %177 = arith.addf %174, %175 : vector<8x128xf32>
    %178 = arith.addf %176, %177 : vector<8x128xf32>
    %c56 = arith.constant 56 : index
    %179 = memref.load %arg1[%c56] : memref<80xf32, #tpu.memory_space<smem>>
    %180 = vector.broadcast %179 : f32 to vector<8x128xf32>
    %181 = arith.addf %178, %180 : vector<8x128xf32>
    %cst_29 = arith.constant 5.000000e-01 : f32
    %182 = vector.broadcast %cst_29 : f32 to vector<8x128xf32>
    %183 = arith.mulf %182, %181 : vector<8x128xf32>
    %184 = math.tanh %183 : vector<8x128xf32>
    %cst_30 = arith.constant 5.000000e-01 : f32
    %185 = vector.broadcast %cst_30 : f32 to vector<8x128xf32>
    %186 = arith.mulf %185, %184 : vector<8x128xf32>
    %cst_31 = arith.constant 5.000000e-01 : f32
    %187 = vector.broadcast %cst_31 : f32 to vector<8x128xf32>
    %188 = arith.addf %187, %186 : vector<8x128xf32>
    %189 = arith.mulf %181, %188 : vector<8x128xf32>
    %c32 = arith.constant 32 : index
    %190 = memref.load %arg1[%c32] : memref<80xf32, #tpu.memory_space<smem>>
    %191 = vector.broadcast %190 : f32 to vector<8x128xf32>
    %192 = arith.mulf %21, %191 : vector<8x128xf32>
    %c33 = arith.constant 33 : index
    %193 = memref.load %arg1[%c33] : memref<80xf32, #tpu.memory_space<smem>>
    %194 = vector.broadcast %193 : f32 to vector<8x128xf32>
    %195 = arith.mulf %39, %194 : vector<8x128xf32>
    %c34 = arith.constant 34 : index
    %196 = memref.load %arg1[%c34] : memref<80xf32, #tpu.memory_space<smem>>
    %197 = vector.broadcast %196 : f32 to vector<8x128xf32>
    %198 = arith.mulf %57, %197 : vector<8x128xf32>
    %c35 = arith.constant 35 : index
    %199 = memref.load %arg1[%c35] : memref<80xf32, #tpu.memory_space<smem>>
    %200 = vector.broadcast %199 : f32 to vector<8x128xf32>
    %201 = arith.mulf %75, %200 : vector<8x128xf32>
    %c36 = arith.constant 36 : index
    %202 = memref.load %arg1[%c36] : memref<80xf32, #tpu.memory_space<smem>>
    %203 = vector.broadcast %202 : f32 to vector<8x128xf32>
    %204 = arith.mulf %93, %203 : vector<8x128xf32>
    %c37 = arith.constant 37 : index
    %205 = memref.load %arg1[%c37] : memref<80xf32, #tpu.memory_space<smem>>
    %206 = vector.broadcast %205 : f32 to vector<8x128xf32>
    %207 = arith.mulf %111, %206 : vector<8x128xf32>
    %c38 = arith.constant 38 : index
    %208 = memref.load %arg1[%c38] : memref<80xf32, #tpu.memory_space<smem>>
    %209 = vector.broadcast %208 : f32 to vector<8x128xf32>
    %210 = arith.mulf %129, %209 : vector<8x128xf32>
    %c39 = arith.constant 39 : index
    %211 = memref.load %arg1[%c39] : memref<80xf32, #tpu.memory_space<smem>>
    %212 = vector.broadcast %211 : f32 to vector<8x128xf32>
    %213 = arith.mulf %147, %212 : vector<8x128xf32>
    %214 = arith.addf %192, %195 : vector<8x128xf32>
    %215 = arith.addf %198, %201 : vector<8x128xf32>
    %216 = arith.addf %204, %207 : vector<8x128xf32>
    %217 = arith.addf %210, %213 : vector<8x128xf32>
    %218 = arith.addf %214, %215 : vector<8x128xf32>
    %219 = arith.addf %216, %217 : vector<8x128xf32>
    %220 = arith.addf %218, %219 : vector<8x128xf32>
    %c57 = arith.constant 57 : index
    %221 = memref.load %arg1[%c57] : memref<80xf32, #tpu.memory_space<smem>>
    %222 = vector.broadcast %221 : f32 to vector<8x128xf32>
    %223 = arith.addf %220, %222 : vector<8x128xf32>
    %cst_32 = arith.constant 5.000000e-01 : f32
    %224 = vector.broadcast %cst_32 : f32 to vector<8x128xf32>
    %225 = arith.mulf %224, %223 : vector<8x128xf32>
    %226 = math.tanh %225 : vector<8x128xf32>
    %cst_33 = arith.constant 5.000000e-01 : f32
    %227 = vector.broadcast %cst_33 : f32 to vector<8x128xf32>
    %228 = arith.mulf %227, %226 : vector<8x128xf32>
    %cst_34 = arith.constant 5.000000e-01 : f32
    %229 = vector.broadcast %cst_34 : f32 to vector<8x128xf32>
    %230 = arith.addf %229, %228 : vector<8x128xf32>
    %231 = arith.mulf %223, %230 : vector<8x128xf32>
    %c40 = arith.constant 40 : index
    %232 = memref.load %arg1[%c40] : memref<80xf32, #tpu.memory_space<smem>>
    %233 = vector.broadcast %232 : f32 to vector<8x128xf32>
    %234 = arith.mulf %21, %233 : vector<8x128xf32>
    %c41 = arith.constant 41 : index
    %235 = memref.load %arg1[%c41] : memref<80xf32, #tpu.memory_space<smem>>
    %236 = vector.broadcast %235 : f32 to vector<8x128xf32>
    %237 = arith.mulf %39, %236 : vector<8x128xf32>
    %c42 = arith.constant 42 : index
    %238 = memref.load %arg1[%c42] : memref<80xf32, #tpu.memory_space<smem>>
    %239 = vector.broadcast %238 : f32 to vector<8x128xf32>
    %240 = arith.mulf %57, %239 : vector<8x128xf32>
    %c43 = arith.constant 43 : index
    %241 = memref.load %arg1[%c43] : memref<80xf32, #tpu.memory_space<smem>>
    %242 = vector.broadcast %241 : f32 to vector<8x128xf32>
    %243 = arith.mulf %75, %242 : vector<8x128xf32>
    %c44 = arith.constant 44 : index
    %244 = memref.load %arg1[%c44] : memref<80xf32, #tpu.memory_space<smem>>
    %245 = vector.broadcast %244 : f32 to vector<8x128xf32>
    %246 = arith.mulf %93, %245 : vector<8x128xf32>
    %c45 = arith.constant 45 : index
    %247 = memref.load %arg1[%c45] : memref<80xf32, #tpu.memory_space<smem>>
    %248 = vector.broadcast %247 : f32 to vector<8x128xf32>
    %249 = arith.mulf %111, %248 : vector<8x128xf32>
    %c46 = arith.constant 46 : index
    %250 = memref.load %arg1[%c46] : memref<80xf32, #tpu.memory_space<smem>>
    %251 = vector.broadcast %250 : f32 to vector<8x128xf32>
    %252 = arith.mulf %129, %251 : vector<8x128xf32>
    %c47 = arith.constant 47 : index
    %253 = memref.load %arg1[%c47] : memref<80xf32, #tpu.memory_space<smem>>
    %254 = vector.broadcast %253 : f32 to vector<8x128xf32>
    %255 = arith.mulf %147, %254 : vector<8x128xf32>
    %256 = arith.addf %234, %237 : vector<8x128xf32>
    %257 = arith.addf %240, %243 : vector<8x128xf32>
    %258 = arith.addf %246, %249 : vector<8x128xf32>
    %259 = arith.addf %252, %255 : vector<8x128xf32>
    %260 = arith.addf %256, %257 : vector<8x128xf32>
    %261 = arith.addf %258, %259 : vector<8x128xf32>
    %262 = arith.addf %260, %261 : vector<8x128xf32>
    %c58 = arith.constant 58 : index
    %263 = memref.load %arg1[%c58] : memref<80xf32, #tpu.memory_space<smem>>
    %264 = vector.broadcast %263 : f32 to vector<8x128xf32>
    %265 = arith.addf %262, %264 : vector<8x128xf32>
    %cst_35 = arith.constant 5.000000e-01 : f32
    %266 = vector.broadcast %cst_35 : f32 to vector<8x128xf32>
    %267 = arith.mulf %266, %265 : vector<8x128xf32>
    %268 = math.tanh %267 : vector<8x128xf32>
    %cst_36 = arith.constant 5.000000e-01 : f32
    %269 = vector.broadcast %cst_36 : f32 to vector<8x128xf32>
    %270 = arith.mulf %269, %268 : vector<8x128xf32>
    %cst_37 = arith.constant 5.000000e-01 : f32
    %271 = vector.broadcast %cst_37 : f32 to vector<8x128xf32>
    %272 = arith.addf %271, %270 : vector<8x128xf32>
    %273 = arith.mulf %265, %272 : vector<8x128xf32>
    %c48 = arith.constant 48 : index
    %274 = memref.load %arg1[%c48] : memref<80xf32, #tpu.memory_space<smem>>
    %275 = vector.broadcast %274 : f32 to vector<8x128xf32>
    %276 = arith.mulf %21, %275 : vector<8x128xf32>
    %c49 = arith.constant 49 : index
    %277 = memref.load %arg1[%c49] : memref<80xf32, #tpu.memory_space<smem>>
    %278 = vector.broadcast %277 : f32 to vector<8x128xf32>
    %279 = arith.mulf %39, %278 : vector<8x128xf32>
    %c50 = arith.constant 50 : index
    %280 = memref.load %arg1[%c50] : memref<80xf32, #tpu.memory_space<smem>>
    %281 = vector.broadcast %280 : f32 to vector<8x128xf32>
    %282 = arith.mulf %57, %281 : vector<8x128xf32>
    %c51 = arith.constant 51 : index
    %283 = memref.load %arg1[%c51] : memref<80xf32, #tpu.memory_space<smem>>
    %284 = vector.broadcast %283 : f32 to vector<8x128xf32>
    %285 = arith.mulf %75, %284 : vector<8x128xf32>
    %c52 = arith.constant 52 : index
    %286 = memref.load %arg1[%c52] : memref<80xf32, #tpu.memory_space<smem>>
    %287 = vector.broadcast %286 : f32 to vector<8x128xf32>
    %288 = arith.mulf %93, %287 : vector<8x128xf32>
    %c53 = arith.constant 53 : index
    %289 = memref.load %arg1[%c53] : memref<80xf32, #tpu.memory_space<smem>>
    %290 = vector.broadcast %289 : f32 to vector<8x128xf32>
    %291 = arith.mulf %111, %290 : vector<8x128xf32>
    %c54 = arith.constant 54 : index
    %292 = memref.load %arg1[%c54] : memref<80xf32, #tpu.memory_space<smem>>
    %293 = vector.broadcast %292 : f32 to vector<8x128xf32>
    %294 = arith.mulf %129, %293 : vector<8x128xf32>
    %c55 = arith.constant 55 : index
    %295 = memref.load %arg1[%c55] : memref<80xf32, #tpu.memory_space<smem>>
    %296 = vector.broadcast %295 : f32 to vector<8x128xf32>
    %297 = arith.mulf %147, %296 : vector<8x128xf32>
    %298 = arith.addf %276, %279 : vector<8x128xf32>
    %299 = arith.addf %282, %285 : vector<8x128xf32>
    %300 = arith.addf %288, %291 : vector<8x128xf32>
    %301 = arith.addf %294, %297 : vector<8x128xf32>
    %302 = arith.addf %298, %299 : vector<8x128xf32>
    %303 = arith.addf %300, %301 : vector<8x128xf32>
    %304 = arith.addf %302, %303 : vector<8x128xf32>
    %c59 = arith.constant 59 : index
    %305 = memref.load %arg1[%c59] : memref<80xf32, #tpu.memory_space<smem>>
    %306 = vector.broadcast %305 : f32 to vector<8x128xf32>
    %307 = arith.addf %304, %306 : vector<8x128xf32>
    %cst_38 = arith.constant 5.000000e-01 : f32
    %308 = vector.broadcast %cst_38 : f32 to vector<8x128xf32>
    %309 = arith.mulf %308, %307 : vector<8x128xf32>
    %310 = math.tanh %309 : vector<8x128xf32>
    %cst_39 = arith.constant 5.000000e-01 : f32
    %311 = vector.broadcast %cst_39 : f32 to vector<8x128xf32>
    %312 = arith.mulf %311, %310 : vector<8x128xf32>
    %cst_40 = arith.constant 5.000000e-01 : f32
    %313 = vector.broadcast %cst_40 : f32 to vector<8x128xf32>
    %314 = arith.addf %313, %312 : vector<8x128xf32>
    %315 = arith.mulf %307, %314 : vector<8x128xf32>
    %c60 = arith.constant 60 : index
    %316 = memref.load %arg1[%c60] : memref<80xf32, #tpu.memory_space<smem>>
    %317 = vector.broadcast %316 : f32 to vector<8x128xf32>
    %318 = arith.mulf %189, %317 : vector<8x128xf32>
    %c61 = arith.constant 61 : index
    %319 = memref.load %arg1[%c61] : memref<80xf32, #tpu.memory_space<smem>>
    %320 = vector.broadcast %319 : f32 to vector<8x128xf32>
    %321 = arith.mulf %231, %320 : vector<8x128xf32>
    %c62 = arith.constant 62 : index
    %322 = memref.load %arg1[%c62] : memref<80xf32, #tpu.memory_space<smem>>
    %323 = vector.broadcast %322 : f32 to vector<8x128xf32>
    %324 = arith.mulf %273, %323 : vector<8x128xf32>
    %c63 = arith.constant 63 : index
    %325 = memref.load %arg1[%c63] : memref<80xf32, #tpu.memory_space<smem>>
    %326 = vector.broadcast %325 : f32 to vector<8x128xf32>
    %327 = arith.mulf %315, %326 : vector<8x128xf32>
    %328 = arith.addf %318, %321 : vector<8x128xf32>
    %329 = arith.addf %324, %327 : vector<8x128xf32>
    %330 = arith.addf %328, %329 : vector<8x128xf32>
    %c76 = arith.constant 76 : index
    %331 = memref.load %arg1[%c76] : memref<80xf32, #tpu.memory_space<smem>>
    %332 = vector.broadcast %331 : f32 to vector<8x128xf32>
    %333 = arith.addf %330, %332 : vector<8x128xf32>
    %c0_41 = arith.constant 0 : index
    %c0_42 = arith.constant 0 : index
    %c0_43 = arith.constant 0 : index
    %334 = vector.load %arg3[%c0_41, %c0_42, %c0_43] : memref<4x8x128xf32, #tpu.memory_space<vmem>>, vector<1x8x128xf32>
    %335 = vector.shape_cast %334 : vector<1x8x128xf32> to vector<8x128xf32>
    %336 = vector.shape_cast %333 : vector<8x128xf32> to vector<1x8x128xf32>
    tpu.vector_store %arg3[%c0_41, %c0_42, %c0_43], %336 {strides = array<i32>} : memref<4x8x128xf32, #tpu.memory_space<vmem>>, vector<1x8x128xf32>,
    %c64 = arith.constant 64 : index
    %337 = memref.load %arg1[%c64] : memref<80xf32, #tpu.memory_space<smem>>
    %338 = vector.broadcast %337 : f32 to vector<8x128xf32>
    %339 = arith.mulf %189, %338 : vector<8x128xf32>
    %c65 = arith.constant 65 : index
    %340 = memref.load %arg1[%c65] : memref<80xf32, #tpu.memory_space<smem>>
    %341 = vector.broadcast %340 : f32 to vector<8x128xf32>
    %342 = arith.mulf %231, %341 : vector<8x128xf32>
    %c66 = arith.constant 66 : index
    %343 = memref.load %arg1[%c66] : memref<80xf32, #tpu.memory_space<smem>>
    %344 = vector.broadcast %343 : f32 to vector<8x128xf32>
    %345 = arith.mulf %273, %344 : vector<8x128xf32>
    %c67 = arith.constant 67 : index
    %346 = memref.load %arg1[%c67] : memref<80xf32, #tpu.memory_space<smem>>
    %347 = vector.broadcast %346 : f32 to vector<8x128xf32>
    %348 = arith.mulf %315, %347 : vector<8x128xf32>
    %349 = arith.addf %339, %342 : vector<8x128xf32>
    %350 = arith.addf %345, %348 : vector<8x128xf32>
    %351 = arith.addf %349, %350 : vector<8x128xf32>
    %c77 = arith.constant 77 : index
    %352 = memref.load %arg1[%c77] : memref<80xf32, #tpu.memory_space<smem>>
    %353 = vector.broadcast %352 : f32 to vector<8x128xf32>
    %354 = arith.addf %351, %353 : vector<8x128xf32>
    %c1_44 = arith.constant 1 : index
    %c0_45 = arith.constant 0 : index
    %c0_46 = arith.constant 0 : index
    %355 = vector.load %arg3[%c1_44, %c0_45, %c0_46] : memref<4x8x128xf32, #tpu.memory_space<vmem>>, vector<1x8x128xf32>
    %356 = vector.shape_cast %355 : vector<1x8x128xf32> to vector<8x128xf32>
    %357 = vector.shape_cast %354 : vector<8x128xf32> to vector<1x8x128xf32>
    tpu.vector_store %arg3[%c1_44, %c0_45, %c0_46], %357 {strides = array<i32>} : memref<4x8x128xf32, #tpu.memory_space<vmem>>, vector<1x8x128xf32>,
    %c68 = arith.constant 68 : index
    %358 = memref.load %arg1[%c68] : memref<80xf32, #tpu.memory_space<smem>>
    %359 = vector.broadcast %358 : f32 to vector<8x128xf32>
    %360 = arith.mulf %189, %359 : vector<8x128xf32>
    %c69 = arith.constant 69 : index
    %361 = memref.load %arg1[%c69] : memref<80xf32, #tpu.memory_space<smem>>
    %362 = vector.broadcast %361 : f32 to vector<8x128xf32>
    %363 = arith.mulf %231, %362 : vector<8x128xf32>
    %c70 = arith.constant 70 : index
    %364 = memref.load %arg1[%c70] : memref<80xf32, #tpu.memory_space<smem>>
    %365 = vector.broadcast %364 : f32 to vector<8x128xf32>
    %366 = arith.mulf %273, %365 : vector<8x128xf32>
    %c71 = arith.constant 71 : index
    %367 = memref.load %arg1[%c71] : memref<80xf32, #tpu.memory_space<smem>>
    %368 = vector.broadcast %367 : f32 to vector<8x128xf32>
    %369 = arith.mulf %315, %368 : vector<8x128xf32>
    %370 = arith.addf %360, %363 : vector<8x128xf32>
    %371 = arith.addf %366, %369 : vector<8x128xf32>
    %372 = arith.addf %370, %371 : vector<8x128xf32>
    %c78 = arith.constant 78 : index
    %373 = memref.load %arg1[%c78] : memref<80xf32, #tpu.memory_space<smem>>
    %374 = vector.broadcast %373 : f32 to vector<8x128xf32>
    %375 = arith.addf %372, %374 : vector<8x128xf32>
    %c2_47 = arith.constant 2 : index
    %c0_48 = arith.constant 0 : index
    %c0_49 = arith.constant 0 : index
    %376 = vector.load %arg3[%c2_47, %c0_48, %c0_49] : memref<4x8x128xf32, #tpu.memory_space<vmem>>, vector<1x8x128xf32>
    %377 = vector.shape_cast %376 : vector<1x8x128xf32> to vector<8x128xf32>
    %378 = vector.shape_cast %375 : vector<8x128xf32> to vector<1x8x128xf32>
    tpu.vector_store %arg3[%c2_47, %c0_48, %c0_49], %378 {strides = array<i32>} : memref<4x8x128xf32, #tpu.memory_space<vmem>>, vector<1x8x128xf32>,
    %c72 = arith.constant 72 : index
    %379 = memref.load %arg1[%c72] : memref<80xf32, #tpu.memory_space<smem>>
    %380 = vector.broadcast %379 : f32 to vector<8x128xf32>
    %381 = arith.mulf %189, %380 : vector<8x128xf32>
    %c73 = arith.constant 73 : index
    %382 = memref.load %arg1[%c73] : memref<80xf32, #tpu.memory_space<smem>>
    %383 = vector.broadcast %382 : f32 to vector<8x128xf32>
    %384 = arith.mulf %231, %383 : vector<8x128xf32>
    %c74 = arith.constant 74 : index
    %385 = memref.load %arg1[%c74] : memref<80xf32, #tpu.memory_space<smem>>
    %386 = vector.broadcast %385 : f32 to vector<8x128xf32>
    %387 = arith.mulf %273, %386 : vector<8x128xf32>
    %c75 = arith.constant 75 : index
    %388 = memref.load %arg1[%c75] : memref<80xf32, #tpu.memory_space<smem>>
    %389 = vector.broadcast %388 : f32 to vector<8x128xf32>
    %390 = arith.mulf %315, %389 : vector<8x128xf32>
    %391 = arith.addf %381, %384 : vector<8x128xf32>
    %392 = arith.addf %387, %390 : vector<8x128xf32>
    %393 = arith.addf %391, %392 : vector<8x128xf32>
    %c79 = arith.constant 79 : index
    %394 = memref.load %arg1[%c79] : memref<80xf32, #tpu.memory_space<smem>>
    %395 = vector.broadcast %394 : f32 to vector<8x128xf32>
    %396 = arith.addf %393, %395 : vector<8x128xf32>
    %c3_50 = arith.constant 3 : index
    %c0_51 = arith.constant 0 : index
    %c0_52 = arith.constant 0 : index
    %397 = vector.load %arg3[%c3_50, %c0_51, %c0_52] : memref<4x8x128xf32, #tpu.memory_space<vmem>>, vector<1x8x128xf32>
    %398 = vector.shape_cast %397 : vector<1x8x128xf32> to vector<8x128xf32>
    %399 = vector.shape_cast %396 : vector<8x128xf32> to vector<1x8x128xf32>
    tpu.vector_store %arg3[%c3_50, %c0_51, %c0_52], %399 {strides = array<i32>} : memref<4x8x128xf32, #tpu.memory_space<vmem>>, vector<1x8x128xf32>,
    return
  }
  func.func @transform_0(%arg0: i32) -> i32 {
    %c0_i32 = arith.constant 0 : i32
    %c0_i32_0 = arith.constant 0 : i32
    return %c0_i32 : i32
  }
  func.func @transform_1(%arg0: i32) -> (i32, i32, i32) {
    %c0_i32 = arith.constant 0 : i32
    %c0_i32_0 = arith.constant 0 : i32
    %c0_i32_1 = arith.constant 0 : i32
    return %c0_i32, %arg0, %c0_i32_0 : i32, i32, i32
  }
  func.func @transform_2(%arg0: i32) -> (i32, i32, i32) {
    %c0_i32 = arith.constant 0 : i32
    %c0_i32_0 = arith.constant 0 : i32
    %c0_i32_1 = arith.constant 0 : i32
    return %c0_i32, %arg0, %c0_i32_0 : i32, i32, i32
  }
}

</mosaic_0001>

<bundles_post_ra>
// kernel: tpu_custom_call.1
= control target key start
LH: loop header
LB: loop body
LE: loop exit
PB: predicated region body
PF: predicated region fallthrough
CT: control target
= control target key end

     0   :  { %7 = vsyncpa [#allocation5], 0  ;;  %s919_s0 = inlined_call_operand.hbm [shape: f32[80], index: 0, kind: input, shape index: {}]   ;;  %s920_s1 = inlined_call_operand.hbm [shape: f32[2,8,128], index: 1, kind: input, shape index: {}]   ;;  %s921_s2 = inlined_call_operand.hbm [shape: f32[4,8,128], index: 2, kind: output, shape index: {}]  }
   0x1   :  { %8 = vsyncpa [#allocation3], 0 }
   0x2   :  { %9 = vsyncpa [#allocation4], 0  ;;  %s15_s11 = sshll.u32 %s919_s0, 4  ;;  %s23_s14 = sshll.u32 %s920_s1, 4  ;;  %s16_s11 = int_to_ptr.hbm [resolvable:$true] %s15_s11  ;;  %s24_s14 = int_to_ptr.hbm [resolvable:$true] %s23_s14 }
   0x3   :  { %s593_s15 = smov [#allocation2]   ;;  %s594_s16 = smov [#allocation6]  }
   0x4   :  { %18 = dma.hbm_to_smem %s16_s11, 16, %s593_s15, [#allocation5]  }
   0x5   :  { %s25_s17 = sshll.u32 %s594_s16, 4  ;;  %s595_s18 = smov 128   ;;  %s26_s17 = int_to_ptr.vmem [resolvable:$true] %s25_s17 }
   0x6   :  { %s596_s19 = smov 8  }
   0x7   :  { %31 = dma.hbm_to_vmem [thread:$0]  %s24_s14, 256, %s26_s17, [#allocation3], %s595_s18, %s595_s18, %s596_s19  }
   0x8   :  { %587 = dma.done.wait [#allocation5], 16  }
   0x9   :  { %588 = vsyncadd [#allocation5], 4294967280 }
   0xa   :  { %589 = dma.done.wait [#allocation3], 256  }
   0xb   :  { %590 = vsyncadd [#allocation3], 4294967040 }
   0xc   :  { %40 = sfence }
   0xd   :  { %s44_s0 = sld [smem:[#allocation2]]  ;;  %v622_v0 = vld [vmem:[#allocation6] sm:$0xff]  ;;  %v624_v1 = vld [vmem:[#allocation6 + $0x8] sm:$0xff] }
   0xe   :  { %s419_s20 = sld [smem:[#allocation2 + $0x1]] }
   0xf   :  { %s420_s1 = sld [smem:[#allocation2 + $0x10]] }
  0x10   :  { %s421_s21 = sld [smem:[#allocation2 + $0x2]] }
  0x11   :  { %s422_s22 = sld [smem:[#allocation2 + $0x3]] }
  0x12   :  { %s423_s23 = sld [smem:[#allocation2 + $0x11]] }
  0x13   :  { %v45_v2 = vstv %s44_s0  ;;  %s424_s24 = sld [smem:[#allocation2 + $0x4]] }
  0x14   :  { %v46_v3 = vmul.f32 %v45_v2, %v622_v0  ;;  %v48_v4 = vstv %s419_s20  ;;  %s425_s25 = sld [smem:[#allocation2 + $0x5]] }
  0x15   :  { %v49_v5 = vmul.f32 %v48_v4, %v624_v1  ;;  %s628_s26 = sld [smem:[#allocation2 + $0x12]]  ;;  %v52_v6 = vstv %s420_s1 }
  0x16   :  { %v60_v7 = vstv %s421_s21  ;;  %s427_s27 = sld [smem:[#allocation2 + $0x6]] }
  0x17   :  { %v50_v8 = vadd.f32 %v49_v5, %v46_v3  ;;  %v61_v9 = vmul.f32 %v60_v7, %v622_v0  ;;  %v63_v10 = vstv %s422_s22  ;;  %s428_s28 = sld [smem:[#allocation2 + $0x7]] }
  0x18   :  { %v64_v11 = vmul.f32 %v63_v10, %v624_v1  ;;  %s632_s29 = sld [smem:[#allocation2 + $0x13]]  ;;  %v67_v13 = vstv %s423_s23 }
  0x19   :  { %v634_v12 = vadd.f32 %v52_v6, %v50_v8  ;;  %v75_v14 = vstv %s424_s24  ;;  %s430_s30 = sld [smem:[#allocation2 + $0x8]] }
  0x1a   :  { %v65_v15 = vadd.f32 %v64_v11, %v61_v9  ;;  %v76_v16 = vmul.f32 %v75_v14, %v622_v0  ;;  %v78_v17 = vstv %s425_s25  ;;  %s431_s3 = sld [smem:[#allocation2 + $0x9]] }
  0x1b   :  { %v54_v18 = vmul.f32 0.5, %v634_v12  ;;  %v79_v19 = vmul.f32 %v78_v17, %v624_v1  ;;  %s639_s4 = sld [smem:[#allocation2 + $0x14]]  ;;  %v82_v21 = vstv %s628_s26 }
  0x1c   :  { %v641_v20 = vadd.f32 %v67_v13, %v65_v15  ;;  %v90_v22 = vstv %s427_s27  ;;  %s433_s5 = sld [smem:[#allocation2 + $0xa]] }
  0x1d   :  { %503 = vtanh.f32 %v54_v18  ;;  %v80_v23 = vadd.f32 %v79_v19, %v76_v16  ;;  %v91_v24 = vmul.f32 %v90_v22, %v622_v0  ;;  %v93_v25 = vstv %s428_s28  ;;  %s434_s6 = sld [smem:[#allocation2 + $0xb]] }
  0x1e   :  { %v69_v26 = vmul.f32 0.5, %v641_v20  ;;  %v94_v27 = vmul.f32 %v93_v25, %v624_v1  ;;  %s647_s7 = sld [smem:[#allocation2 + $0x15]]  ;;  %v97_v29 = vstv %s632_s29 }
  0x1f   :  { %v649_v28 = vadd.f32 %v82_v21, %v80_v23  ;;  %v105_v30 = vstv %s430_s30  ;;  %s436_s8 = sld [smem:[#allocation2 + $0xc]] }
  0x20   :  { %505 = vtanh.f32 %v69_v26  ;;  %v95_v31 = vadd.f32 %v94_v27, %v91_v24  ;;  %v106_v32 = vmul.f32 %v105_v30, %v622_v0  ;;  %v108_v33 = vstv %s431_s3  ;;  %s653_s9 = sld [smem:[#allocation2 + $0xd]] }
  0x21   :  { %v84_v34 = vmul.f32 0.5, %v649_v28  ;;  %v109_v35 = vmul.f32 %v108_v33, %v624_v1  ;;  %s657_s10 = sld [smem:[#allocation2 + $0x16]]  ;;  %v112_v37 = vstv %s639_s4 }
  0x22   :  { %v659_v36 = vadd.f32 %v97_v29, %v95_v31  ;;  %v120_v38 = vstv %s433_s5  ;;  %s662_s11 = sld [smem:[#allocation2 + $0xe]] }
  0x23   :  { %v504_v39 = vpop.eup %503  ;;  %507 = vtanh.f32 %v84_v34  ;;  %v110_v40 = vadd.f32 %v109_v35, %v106_v32  ;;  %v121_v41 = vmul.f32 %v120_v38, %v622_v0  ;;  %v123_v42 = vstv %s434_s6  ;;  %s665_s12 = sld [smem:[#allocation2 + $0xf]] }
  0x24   :  { %v56_v43 = vmul.f32 0.5, %v504_v39  ;;  %v99_v44 = vmul.f32 0.5, %v659_v36  ;;  %v124_v45 = vmul.f32 %v123_v42, %v624_v1  ;;  %s669_s13 = sld [smem:[#allocation2 + $0x17]]  ;;  %v127_v47 = vstv %s647_s7 }
  0x25   :  { %v671_v46 = vadd.f32 %v112_v37, %v110_v40  ;;  %v135_v48 = vstv %s436_s8  ;;  %s674_s14 = sld [smem:[#allocation2 + $0x18]] }
  0x26   :  { %v506_v49 = vpop.eup %505  ;;  %509 = vtanh.f32 %v99_v44  ;;  %v125_v50 = vadd.f32 %v124_v45, %v121_v41  ;;  %v136_v51 = vmul.f32 %v135_v48, %v622_v0  ;;  %s677_s15 = sld [smem:[#allocation2 + $0x19]]  ;;  %v57_v52 = vadd.f32 0.5, %v56_v43 }
  0x27   :  { %v71_v53 = vmul.f32 0.5, %v506_v49  ;;  %v114_v54 = vmul.f32 0.5, %v671_v46  ;;  %v138_v55 = vstv %s653_s9  ;;  %s681_s16 = sld [smem:[#allocation2 + $0x1a]]  ;;  %v142_v58 = vstv %s657_s10 }
  0x28   :  { %v683_v56 = vadd.f32 %v127_v47, %v125_v50  ;;  %v139_v57 = vmul.f32 %v138_v55, %v624_v1  ;;  %v150_v59 = vstv %s662_s11  ;;  %s688_s17 = sld [smem:[#allocation2 + $0x1b]]  ;;  %v706_v9 = vmul.f32 %v57_v52, %v634_v12 }
  0x29   :  { %v508_v60 = vpop.eup %507  ;;  %v72_v61 = vadd.f32 0.5, %v71_v53  ;;  %511 = vtanh.f32 %v114_v54  ;;  %v151_v62 = vmul.f32 %v150_v59, %v622_v0  ;;  %v153_v63 = vstv %s665_s12  ;;  %s692_s0 = sld [smem:[#allocation2 + $0x1c]] }
  0x2a   :  { %v86_v2 = vmul.f32 0.5, %v508_v60  ;;  %v129_v3 = vmul.f32 0.5, %v683_v56  ;;  %v140_v4 = vadd.f32 %v139_v57, %v136_v51  ;;  %v154_v5 = vmul.f32 %v153_v63, %v624_v1  ;;  %s696_s20 = sld [smem:[#allocation2 + $0x1d]] }
  0x2b   :  { %v157_v6 = vstv %s669_s13  ;;  %s699_s1 = sld [smem:[#allocation2 + $0x1e]]  ;;  %v711_v1 = vmul.f32 %v72_v61, %v641_v20  ;;  %v165_v15 = vstv %s674_s14 }
  0x2c   :  { %v510_v7 = vpop.eup %509  ;;  %513 = vtanh.f32 %v129_v3  ;;  %v701_v8 = vadd.f32 %v142_v58, %v140_v4  ;;  %v155_v0 = vadd.f32 %v154_v5, %v151_v62  ;;  %s703_s21 = sld [smem:[#allocation2 + $0x1f]]  ;;  %v87_v10 = vadd.f32 0.5, %v86_v2 }
  0x2d   :  { %v101_v11 = vmul.f32 0.5, %v510_v7  ;;  %s708_s22 = sld [smem:[#allocation2 + $0x38]]  ;;  %v168_v18 = vstv %s677_s15  ;;  %v166_v21 = vmul.f32 %v165_v15, %v706_v9  ;;  %v171_v25 = vstv %s681_s16 }
  0x2e   :  { %v144_v13 = vmul.f32 0.5, %v701_v8  ;;  %v714_v14 = vadd.f32 %v157_v6, %v155_v0  ;;  %s717_s23 = sld [smem:[#allocation2 + $0x20]]  ;;  %v726_v20 = vmul.f32 %v87_v10, %v649_v28  ;;  %v169_v24 = vmul.f32 %v168_v18, %v711_v1 }
  0x2f   :  { %v512_v16 = vpop.eup %511  ;;  %v102_v17 = vadd.f32 0.5, %v101_v11  ;;  %s720_s24 = sld [smem:[#allocation2 + $0x21]]  ;;  %v174_v28 = vstv %s688_s17  ;;  %v177_v29 = vstv %s692_s0 }
  0x30   :  { %v116_v12 = vmul.f32 0.5, %v512_v16  ;;  %515 = vtanh.f32 %v144_v13  ;;  %v159_v19 = vmul.f32 0.5, %v714_v14  ;;  %s723_s25 = sld [smem:[#allocation2 + $0x22]]  ;;  %v172_v33 = vmul.f32 %v171_v25, %v726_v20 }
  0x31   :  { %s729_s26 = sld [smem:[#allocation2 + $0x23]]  ;;  %v736_v26 = vmul.f32 %v102_v17, %v659_v36  ;;  %v180_v36 = vstv %s696_s20  ;;  %v183_v37 = vstv %s699_s1  ;;  %v188_v38 = vadd.f32 %v169_v24, %v166_v21 }
  0x32   :  { %v514_v22 = vpop.eup %513  ;;  %v117_v23 = vadd.f32 0.5, %v116_v12  ;;  %517 = vtanh.f32 %v159_v19  ;;  %s733_s27 = sld [smem:[#allocation2 + $0x24]]  ;;  %v186_v59 = vstv %s703_s21 }
  0x33   :  { %v131_v27 = vmul.f32 0.5, %v514_v22  ;;  %s738_s28 = sld [smem:[#allocation2 + $0x25]]  ;;  %v175_v42 = vmul.f32 %v174_v28, %v736_v26 }
  0x34   :  { %v204_v30 = vstv %s717_s23  ;;  %s743_s29 = sld [smem:[#allocation2 + $0x26]]  ;;  %v746_v31 = vmul.f32 %v117_v23, %v671_v46  ;;  %v196_v23 = vstv %s708_s22 }
  0x35   :  { %v132_v32 = vadd.f32 0.5, %v131_v27  ;;  %v207_v34 = vstv %s720_s24  ;;  %s750_s30 = sld [smem:[#allocation2 + $0x27]]  ;;  %v205_v43 = vmul.f32 %v204_v30, %v706_v9  ;;  %v189_v61 = vadd.f32 %v175_v42, %v172_v33 }
  0x36   :  { %v516_v35 = vpop.eup %515  ;;  %v210_v39 = vstv %s723_s25  ;;  %s755_s3 = sld [smem:[#allocation2 + $0x39]]  ;;  %v208_v45 = vmul.f32 %v207_v34, %v711_v1  ;;  %v178_v51 = vmul.f32 %v177_v29, %v746_v31 }
  0x37   :  { %v758_v40 = vmul.f32 %v132_v32, %v683_v56  ;;  %v146_v41 = vmul.f32 0.5, %v516_v35  ;;  %s762_s4 = sld [smem:[#allocation2 + $0x28]]  ;;  %v211_v46 = vmul.f32 %v210_v39, %v726_v20  ;;  %v213_v47 = vstv %s729_s26 }
  0x38   :  { %v518_v44 = vpop.eup %517  ;;  %v216_v48 = vstv %s733_s27  ;;  %s768_s5 = sld [smem:[#allocation2 + $0x29]]  ;;  %v214_v52 = vmul.f32 %v213_v47, %v736_v26  ;;  %v227_v63 = vadd.f32 %v208_v45, %v205_v43  ;;  %v192_v15 = vadd.f32 %v189_v61, %v188_v38 }
  0x39   :  { %v147_v49 = vadd.f32 0.5, %v146_v41  ;;  %v161_v50 = vmul.f32 0.5, %v518_v44  ;;  %s772_s6 = sld [smem:[#allocation2 + $0x2a]]  ;;  %v181_v53 = vmul.f32 %v180_v36, %v758_v40  ;;  %v217_v54 = vmul.f32 %v216_v48, %v746_v31 }
  0x3a   :  { %v219_v55 = vstv %s738_s28  ;;  %v222_v56 = vstv %s743_s29  ;;  %s778_s7 = sld [smem:[#allocation2 + $0x2b]]  ;;  %v228_v2 = vadd.f32 %v214_v52, %v211_v46 }
  0x3b   :  { %v781_v57 = vmul.f32 %v147_v49, %v701_v8  ;;  %v162_v58 = vadd.f32 0.5, %v161_v50  ;;  %v220_v60 = vmul.f32 %v219_v55, %v758_v40  ;;  %s785_s8 = sld [smem:[#allocation2 + $0x2c]]  ;;  %v225_v62 = vstv %s750_s30 }
  0x3c   :  { %s788_s9 = sld [smem:[#allocation2 + $0x2d]]  ;;  %v190_v6 = vadd.f32 %v181_v53, %v178_v51  ;;  %v231_v16 = vadd.f32 %v228_v2, %v227_v63  ;;  %v235_v33 = vstv %s755_s3 }
  0x3d   :  { %v791_v3 = vmul.f32 %v162_v58, %v714_v14  ;;  %v184_v4 = vmul.f32 %v183_v37, %v781_v57  ;;  %v223_v5 = vmul.f32 %v222_v56, %v781_v57  ;;  %s795_s10 = sld [smem:[#allocation2 + $0x2e]]  ;;  %v229_v7 = vadd.f32 %v220_v60, %v217_v54 }
  0x3e   :  { %v243_v8 = vstv %s762_s4  ;;  %v246_v0 = vstv %s768_s5  ;;  %s799_s11 = sld [smem:[#allocation2 + $0x2f]] }
  0x3f   :  { %v187_v10 = vmul.f32 %v186_v59, %v791_v3  ;;  %v226_v11 = vmul.f32 %v225_v62, %v791_v3  ;;  %v244_v13 = vmul.f32 %v243_v8, %v706_v9  ;;  %v247_v14 = vmul.f32 %v246_v0, %v711_v1  ;;  %s805_s12 = sld [smem:[#allocation2 + $0x3a]] }
  0x40   :  { %v249_v17 = vstv %s772_s6  ;;  %v252_v18 = vstv %s778_s7  ;;  %s809_s13 = sld [smem:[#allocation2 + $0x30]] }
  0x41   :  { %v191_v12 = vadd.f32 %v187_v10, %v184_v4  ;;  %v230_v19 = vadd.f32 %v226_v11, %v223_v5  ;;  %v250_v21 = vmul.f32 %v249_v17, %v726_v20  ;;  %v253_v22 = vmul.f32 %v252_v18, %v736_v26  ;;  %s813_s14 = sld [smem:[#allocation2 + $0x31]] }
  0x42   :  { %v255_v24 = vstv %s785_s8  ;;  %v258_v25 = vstv %s788_s9  ;;  %v266_v27 = vadd.f32 %v247_v14, %v244_v13  ;;  %s818_s15 = sld [smem:[#allocation2 + $0x32]] }
  0x43   :  { %v193_v28 = vadd.f32 %v191_v12, %v190_v6  ;;  %v232_v29 = vadd.f32 %v230_v19, %v229_v7  ;;  %v256_v30 = vmul.f32 %v255_v24, %v746_v31  ;;  %v259_v32 = vmul.f32 %v258_v25, %v758_v40  ;;  %s822_s16 = sld [smem:[#allocation2 + $0x33]] }
  0x44   :  { %v261_v34 = vstv %s795_s10  ;;  %v264_v35 = vstv %s799_s11  ;;  %v267_v36 = vadd.f32 %v253_v22, %v250_v21  ;;  %s473_s17 = sld [smem:[#allocation2 + $0x34]] }
  0x45   :  { %v194_v37 = vadd.f32 %v193_v28, %v192_v15  ;;  %v233_v38 = vadd.f32 %v232_v29, %v231_v16  ;;  %v262_v39 = vmul.f32 %v261_v34, %v781_v57  ;;  %v265_v41 = vmul.f32 %v264_v35, %v791_v3  ;;  %s474_s0 = sld [smem:[#allocation2 + $0x35]] }
  0x46   :  { %v268_v42 = vadd.f32 %v259_v32, %v256_v30  ;;  %v282_v43 = vstv %s809_s13  ;;  %s475_s20 = sld [smem:[#allocation2 + $0x36]]  ;;  %v270_v47 = vadd.f32 %v267_v36, %v266_v27  ;;  %v274_v55 = vstv %s805_s12 }
  0x47   :  { %v830_v44 = vadd.f32 %v196_v23, %v194_v37  ;;  %v832_v45 = vadd.f32 %v235_v33, %v233_v38  ;;  %v269_v46 = vadd.f32 %v265_v41, %v262_v39  ;;  %s476_s1 = sld [smem:[#allocation2 + $0x37]]  ;;  %v283_v48 = vmul.f32 %v282_v43, %v706_v9 }
  0x48   :  { %v285_v49 = vstv %s813_s14  ;;  %v288_v50 = vstv %s818_s15  ;;  %s845_s21 = sld [smem:[#allocation2 + $0x3b]]  ;;  %s597_s14 = smov [#allocation7]  }
  0x49   :  { %v198_v51 = vmul.f32 0.5, %v830_v44  ;;  %v237_v52 = vmul.f32 0.5, %v832_v45  ;;  %v271_v53 = vadd.f32 %v269_v46, %v268_v42  ;;  %v286_v54 = vmul.f32 %v285_v49, %v711_v1  ;;  %s849_s22 = sld [smem:[#allocation2 + $0x3c]]  ;;  %s403_s15 = sshll.u32 %s597_s14, 4  ;;  %s404_s15 = int_to_ptr.vmem [resolvable:$true] %s403_s15 }
  0x4a   :  { %v289_v56 = vmul.f32 %v288_v50, %v726_v20  ;;  %v291_v58 = vstv %s822_s16  ;;  %v294_v59 = vstv %s473_s17  ;;  %s852_s23 = sld [smem:[#allocation2 + $0x3d]] }
  0x4b   :  { %519 = vtanh.f32 %v198_v51  ;;  %v272_v60 = vadd.f32 %v271_v53, %v270_v47  ;;  %v292_v61 = vmul.f32 %v291_v58, %v736_v26  ;;  %v295_v9 = vmul.f32 %v294_v59, %v746_v31  ;;  %s854_s24 = sld [smem:[#allocation2 + $0x3e]] }
  0x4c   :  { %521 = vtanh.f32 %v237_v52  ;;  %v297_v62 = vstv %s474_s0  ;;  %v300_v63 = vstv %s475_s20  ;;  %v305_v2 = vadd.f32 %v286_v54, %v283_v48  ;;  %s856_s25 = sld [smem:[#allocation2 + $0x3f]]  ;;  %s405_s0 = sshll.u32 %s921_s2, 4  ;;  %s406_s0 = int_to_ptr.hbm [resolvable:$true] %s405_s0 }
  0x4d   :  { %v275_v4 = vadd.f32 %v274_v55, %v272_v60  ;;  %v298_v1 = vmul.f32 %v297_v62, %v758_v40  ;;  %v301_v5 = vmul.f32 %v300_v63, %v781_v57  ;;  %v303_v20 = vstv %s476_s1  ;;  %s858_s26 = sld [smem:[#allocation2 + $0x40]] }
  0x4e   :  { %v304_v6 = vmul.f32 %v303_v20, %v791_v3  ;;  %v306_v26 = vadd.f32 %v292_v61, %v289_v56  ;;  %s860_s27 = sld [smem:[#allocation2 + $0x41]]  ;;  %v313_v3 = vstv %s845_s21 }
  0x4f   :  { %v276_v31 = vmul.f32 0.5, %v275_v4  ;;  %v307_v7 = vadd.f32 %v298_v1, %v295_v9  ;;  %s863_s28 = sld [smem:[#allocation2 + $0x42]]  ;;  %v321_v24 = vstv %s849_s22 }
  0x50   :  { %v308_v8 = vadd.f32 %v304_v6, %v301_v5  ;;  %v309_v0 = vadd.f32 %v306_v26, %v305_v2  ;;  %s865_s29 = sld [smem:[#allocation2 + $0x43]]  ;;  %v324_v25 = vstv %s852_s23 }
  0x51   :  { %v520_v40 = vpop.eup %519  ;;  %523 = vtanh.f32 %v276_v31  ;;  %s867_s30 = sld [smem:[#allocation2 + $0x44]]  ;;  %v327_v32 = vstv %s854_s24 }
  0x52   :  { %v522_v57 = vpop.eup %521  ;;  %v310_v10 = vadd.f32 %v308_v8, %v307_v7  ;;  %v200_v11 = vmul.f32 0.5, %v520_v40  ;;  %s869_s3 = sld [smem:[#allocation2 + $0x45]]  ;;  %v330_v51 = vstv %s856_s25 }
  0x53   :  { %v239_v13 = vmul.f32 0.5, %v522_v57  ;;  %s871_s4 = sld [smem:[#allocation2 + $0x46]]  ;;  %v340_v27 = vstv %s858_s26 }
  0x54   :  { %v311_v14 = vadd.f32 %v310_v10, %v309_v0  ;;  %v201_v17 = vadd.f32 0.5, %v200_v11  ;;  %s873_s5 = sld [smem:[#allocation2 + $0x48]]  ;;  %v343_v28 = vstv %s860_s27 }
  0x55   :  { %v240_v18 = vadd.f32 0.5, %v239_v13  ;;  %s875_s6 = sld [smem:[#allocation2 + $0x49]]  ;;  %v346_v33 = vstv %s863_s28 }
  0x56   :  { %v314_v15 = vadd.f32 %v313_v3, %v311_v14  ;;  %s877_s7 = sld [smem:[#allocation2 + $0x4a]]  ;;  %v202_v21 = vmul.f32 %v201_v17, %v830_v44  ;;  %v349_v53 = vstv %s865_s29 }
  0x57   :  { %v524_v16 = vpop.eup %523  ;;  %s879_s8 = sld [smem:[#allocation2 + $0x47]]  ;;  %v241_v22 = vmul.f32 %v240_v18, %v832_v45  ;;  %v360_v29 = vstv %s867_s30 }
  0x58   :  { %v278_v12 = vmul.f32 0.5, %v524_v16  ;;  %v315_v19 = vmul.f32 0.5, %v314_v15  ;;  %s883_s9 = sld [smem:[#allocation2 + $0x4b]]  ;;  %v363_v30 = vstv %s869_s3  ;;  %v322_v38 = vmul.f32 %v321_v24, %v202_v21 }
  0x59   :  { %s892_s10 = sld [smem:[#allocation2 + $0x4c]]  ;;  %v325_v39 = vmul.f32 %v324_v25, %v241_v22  ;;  %v341_v41 = vmul.f32 %v340_v27, %v202_v21  ;;  %v344_v43 = vmul.f32 %v343_v28, %v241_v22  ;;  %v361_v44 = vmul.f32 %v360_v29, %v202_v21 }
  0x5a   :  { %525 = vtanh.f32 %v315_v19  ;;  %v279_v23 = vadd.f32 0.5, %v278_v12  ;;  %v380_v34 = vstv %s873_s5  ;;  %s897_s11 = sld [smem:[#allocation2 + $0x4d]]  ;;  %v364_v45 = vmul.f32 %v363_v30, %v241_v22 }
  0x5b   :  { %v383_v35 = vstv %s875_s6  ;;  %s899_s12 = sld [smem:[#allocation2 + $0x4e]]  ;;  %v366_v46 = vstv %s871_s4  ;;  %v381_v47 = vmul.f32 %v380_v34, %v202_v21  ;;  %v332_v61 = vadd.f32 %v325_v39, %v322_v38 }
  0x5c   :  { %v280_v37 = vmul.f32 %v279_v23, %v275_v4  ;;  %v384_v48 = vmul.f32 %v383_v35, %v241_v22  ;;  %v386_v49 = vstv %s877_s7  ;;  %s903_s13 = sld [smem:[#allocation2 + $0x4f]]  ;;  %v351_v9 = vadd.f32 %v344_v43, %v341_v41 }
  0x5d   :  { %v369_v54 = vstv %s879_s8  ;;  %v371_v62 = vadd.f32 %v364_v45, %v361_v44 }
  0x5e   :  { %v328_v52 = vmul.f32 %v327_v32, %v280_v37  ;;  %v389_v55 = vstv %s883_s9  ;;  %v347_v58 = vmul.f32 %v346_v33, %v280_v37  ;;  %v367_v59 = vmul.f32 %v366_v46, %v280_v37 }
  0x5f   :  { %v387_v60 = vmul.f32 %v386_v49, %v280_v37  ;;  %v391_v63 = vadd.f32 %v384_v48, %v381_v47  ;;  %v336_v7 = vstv %s892_s10 }
  0x60   :  { %v526_v36 = vpop.eup %525  ;;  %v355_v8 = vstv %s897_s11 }
  0x61   :  { %v317_v42 = vmul.f32 0.5, %v526_v36  ;;  %v375_v0 = vstv %s899_s12 }
  0x62   :  { %v395_v40 = vstv %s903_s13 }
  0x63   :  { %v318_v50 = vadd.f32 0.5, %v317_v42 }
  0x65   :  { %v319_v56 = vmul.f32 %v318_v50, %v314_v15 }
  0x67   :  { %v331_v2 = vmul.f32 %v330_v51, %v319_v56  ;;  %v350_v4 = vmul.f32 %v349_v53, %v319_v56  ;;  %v370_v1 = vmul.f32 %v369_v54, %v319_v56  ;;  %v390_v5 = vmul.f32 %v389_v55, %v319_v56 }
  0x69   :  { %v333_v20 = vadd.f32 %v331_v2, %v328_v52  ;;  %v352_v6 = vadd.f32 %v350_v4, %v347_v58  ;;  %v372_v26 = vadd.f32 %v370_v1, %v367_v59  ;;  %v392_v31 = vadd.f32 %v390_v5, %v387_v60 }
  0x6b   :  { %v334_v57 = vadd.f32 %v333_v20, %v332_v61  ;;  %v353_v10 = vadd.f32 %v352_v6, %v351_v9  ;;  %v373_v3 = vadd.f32 %v372_v26, %v371_v62  ;;  %v393_v11 = vadd.f32 %v392_v31, %v391_v63 }
  0x6d   :  { %v337_v13 = vadd.f32 %v336_v7, %v334_v57  ;;  %v356_v14 = vadd.f32 %v355_v8, %v353_v10  ;;  %v376_v15 = vadd.f32 %v375_v0, %v373_v3  ;;  %v396_v16 = vadd.f32 %v395_v40, %v393_v11 }
  0x6f   :  { %338 = vst [vmem:[#allocation7] sm:$0xff] %v337_v13 }
  0x70   :  { %358 = vst [vmem:[#allocation7 + $0x8] sm:$0xff] %v356_v14 }
  0x71   :  { %378 = vst [vmem:[#allocation7 + $0x10] sm:$0xff] %v376_v15 }
  0x72   :  { %398 = vst [vmem:[#allocation7 + $0x18] sm:$0xff] %v396_v16 }
  0x73   :  { %411 = dma.vmem_to_hbm [thread:$0]  %s404_s15, 512, %s406_s0, [#allocation4], %s595_s18, %s595_s18, %s596_s19  }
  0x74   :  { %591 = dma.done.wait [#allocation4], 512  }
  0x75   :  { %592 = vsyncadd [#allocation4], 4294966784 }
  0x76   :  { %416 = vsyncpa [#allocation3], 1 }
  0x77   :  { %417 = vsyncpa [#allocation4], 1 }
  0x78   :  { %418 = vsyncpa [#allocation5], 1 }

</bundles_post_ra>
